<compile_context>
chip_gen: v7x
topology: tpu7x:2x2x1
jax: 0.10.0
libtpu: 0.0.40
codegen_flags: <defaults>
</compile_context>

<pallas_src>
import functools

import jax
import jax.numpy as jnp
from jax.experimental import pallas as pl
from jax.experimental.pallas import tpu as pltpu


def _biasfree_layernorm_kernel(x_ref, w_ref, o_ref, *, eps, inv_c):
    # x_ref: (block_rows, C) tile in VMEM; w_ref: (1, C) f32 weight (resident).
    x = x_ref[...].astype(jnp.float32)          # no-op when input is already f32
    # Single-pass biased variance over the lane axis; mean is only used inside
    # var and NOT subtracted from x (the "bias-free" part).
    mean = jnp.sum(x, axis=-1, keepdims=True) * inv_c
    mean_sq = jnp.sum(x * x, axis=-1, keepdims=True) * inv_c
    var = jnp.maximum(mean_sq - mean * mean, 0.0)
    inv = jax.lax.rsqrt(var + eps)              # EUP rsqrt
    o_ref[...] = (x * inv * w_ref[...]).astype(o_ref.dtype)


def biasfree_layernorm(x, weight, *, eps=1e-5, block_rows=None):
    """Bias-free LayerNorm over the last dimension of `x`.

    x:      (..., C) array
    weight: (C,) scale parameter
    """
    orig_shape = x.shape
    C = orig_shape[-1]
    assert weight.shape == (C,)

    x2 = x.reshape(-1, C)
    rows = x2.shape[0]

    itemsize = jnp.dtype(x.dtype).itemsize
    # Sublane packing: rows-per-vreg is 8 for 32-bit, 16 for bf16, 32 for int8.
    row_align = max(8, 32 // max(itemsize, 1))

    if block_rows is None:
        # Target ~2 MiB (f32-equivalent) input tile; sweep range 256-2048 rows.
        target_tile_bytes = 2 << 20
        block_rows = max(row_align, target_tile_bytes // (C * 4))
        block_rows = min(block_rows, 2048)
    # Align to sublane packing, and never exceed the (rounded-up) row count.
    block_rows = max(row_align, (block_rows // row_align) * row_align)
    rows_ceil = ((rows + row_align - 1) // row_align) * row_align
    block_rows = min(block_rows, rows_ceil)

    grid = (pl.cdiv(rows, block_rows),)  # ragged final block: no jnp.pad needed

    # Hoist the weight cast out of the kernel; (1, C) stays VMEM-resident.
    w2 = weight.astype(jnp.float32).reshape(1, C)

    # VMEM budget: double-buffered in/out tiles + f32 kernel temporaries + weight,
    # with 2x headroom, clamped to [32 MiB, 48 MiB] (safe on v7x's 64 MiB VMEM).
    block_bytes = block_rows * C * itemsize
    est = 4 * block_bytes + 3 * block_rows * C * 4 + 2 * C * 4
    vmem_limit = int(min(48 << 20, max(32 << 20, 2 * est)))

    out = pl.pallas_call(
        functools.partial(_biasfree_layernorm_kernel, eps=eps, inv_c=1.0 / C),
        out_shape=jax.ShapeDtypeStruct((rows, C), x.dtype),
        grid_spec=pltpu.PrefetchScalarGridSpec(
            num_scalar_prefetch=0,
            grid=grid,
            in_specs=[
                pl.BlockSpec((block_rows, C), lambda i: (i, 0)),
                pl.BlockSpec((1, C), lambda i: (0, 0)),
            ],
            out_specs=pl.BlockSpec((block_rows, C), lambda i: (i, 0)),
        ),
        compiler_params=pltpu.CompilerParams(
            dimension_semantics=("parallel",),  # lets v7x split rows across 2 TCs
            vmem_limit_bytes=vmem_limit,
        ),
    )(x2, w2)

    return out.reshape(orig_shape)


if __name__ == "__main__":
    key = jax.random.PRNGKey(0)
    k1, k2 = jax.random.split(key)

    def ref_fn(x, w, eps=1e-5):
        xf = x.astype(jnp.float32)
        mu = jnp.mean(xf, axis=-1, keepdims=True)
        var = jnp.mean((xf - mu) ** 2, axis=-1, keepdims=True)
        return (xf / jnp.sqrt(var + eps) * w).astype(x.dtype)

    # Case 1: token layout (batch, seq, hidden), LayerNorm over hidden;
    # weight = ones matches nn.Parameter(torch.ones(normalized_shape)).
    batch, seq, hidden = 2, 8, 32
    x1 = jax.random.normal(k1, (batch, seq, hidden), dtype=jnp.float32)
    w1 = jnp.ones((hidden,), dtype=jnp.float32)
    out1 = jax.block_until_ready(biasfree_layernorm(x1, w1))
    assert jnp.allclose(out1, ref_fn(x1, w1), atol=1e-5, rtol=1e-5), "case 1 mismatch"

    # Case 2: ragged row count (rows % block_rows != 0) exercises the pad-free
    # cdiv grid path with a partial final block, plus a non-trivial weight.
    x2 = jax.random.normal(k2, (3, 7, 48), dtype=jnp.float32)
    w2 = 0.5 + 0.01 * jnp.arange(48, dtype=jnp.float32)
    out2 = jax.block_until_ready(biasfree_layernorm(x2, w2, block_rows=8))
    assert jnp.allclose(out2, ref_fn(x2, w2), atol=1e-5, rtol=1e-5), "case 2 mismatch"

    print("KERNEL_OK")
</pallas_src>

<mosaic_0001>
module attributes {stable_mosaic.version = 11 : i64} {
  func.func @_biasfree_layernorm_kernel(%arg0: i32, %arg1: memref<16x32xf32, #tpu.memory_space<vmem>>, %arg2: memref<1x32xf32, #tpu.memory_space<vmem>>, %arg3: memref<16x32xf32, #tpu.memory_space<vmem>>) attributes {dimension_semantics = [#tpu.dimension_semantics<parallel>], iteration_bounds = array<i64: 1>, scalar_prefetch = 0 : i64, scratch_operands = 0 : i64, tpu.core_type = #tpu.core_type<tc>, window_params = [{transform_indices = @transform_0, window_bounds = array<i64: 16, 32>}, {pipeline_mode = #tpu.pipeline_mode<synchronous>, transform_indices = @transform_1, window_bounds = array<i64: 1, 32>}, {transform_indices = @transform_2, window_bounds = array<i64: 16, 32>}]} {
    %c0 = arith.constant 0 : index
    %c0_0 = arith.constant 0 : index
    %0 = vector.load %arg1[%c0, %c0_0] : memref<16x32xf32, #tpu.memory_space<vmem>>, vector<16x32xf32>
    %cst = arith.constant dense<0.000000e+00> : vector<16xf32>
    %1 = vector.multi_reduction <add>, %0, %cst [1] : vector<16x32xf32> to vector<16xf32>
    %2 = vector.shape_cast %1 : vector<16xf32> to vector<16x1xf32>
    %cst_1 = arith.constant 3.125000e-02 : f32
    %3 = vector.broadcast %cst_1 : f32 to vector<16x1xf32>
    %4 = arith.mulf %2, %3 : vector<16x1xf32>
    %5 = arith.mulf %0, %0 : vector<16x32xf32>
    %cst_2 = arith.constant dense<0.000000e+00> : vector<16xf32>
    %6 = vector.multi_reduction <add>, %5, %cst_2 [1] : vector<16x32xf32> to vector<16xf32>
    %7 = vector.shape_cast %6 : vector<16xf32> to vector<16x1xf32>
    %cst_3 = arith.constant 3.125000e-02 : f32
    %8 = vector.broadcast %cst_3 : f32 to vector<16x1xf32>
    %9 = arith.mulf %7, %8 : vector<16x1xf32>
    %10 = arith.mulf %4, %4 : vector<16x1xf32>
    %11 = arith.subf %9, %10 : vector<16x1xf32>
    %cst_4 = arith.constant 0.000000e+00 : f32
    %12 = vector.broadcast %cst_4 : f32 to vector<16x1xf32>
    %13 = arith.maximumf %11, %12 : vector<16x1xf32>
    %cst_5 = arith.constant 9.99999974E-6 : f32
    %14 = vector.broadcast %cst_5 : f32 to vector<16x1xf32>
    %15 = arith.addf %13, %14 : vector<16x1xf32>
    %16 = math.rsqrt %15 : vector<16x1xf32>
    %17 = vector.broadcast %16 : vector<16x1xf32> to vector<16x32xf32>
    %18 = arith.mulf %0, %17 : vector<16x32xf32>
    %c0_6 = arith.constant 0 : index
    %c0_7 = arith.constant 0 : index
    %19 = vector.load %arg2[%c0_6, %c0_7] : memref<1x32xf32, #tpu.memory_space<vmem>>, vector<1x32xf32>
    %20 = vector.broadcast %19 : vector<1x32xf32> to vector<16x32xf32>
    %21 = arith.mulf %18, %20 : vector<16x32xf32>
    %c0_8 = arith.constant 0 : index
    %c0_9 = arith.constant 0 : index
    %22 = vector.load %arg3[%c0_8, %c0_9] : memref<16x32xf32, #tpu.memory_space<vmem>>, vector<16x32xf32>
    tpu.vector_store %arg3[%c0_8, %c0_9], %21 {strides = array<i32>} : memref<16x32xf32, #tpu.memory_space<vmem>>, vector<16x32xf32>,
    return
  }
  func.func @transform_0(%arg0: i32) -> (i32, i32) {
    %c0_i32 = arith.constant 0 : i32
    %c0_i32_0 = arith.constant 0 : i32
    return %arg0, %c0_i32 : i32, i32
  }
  func.func @transform_1(%arg0: i32) -> (i32, i32) {
    %c0_i32 = arith.constant 0 : i32
    %c0_i32_0 = arith.constant 0 : i32
    %c0_i32_1 = arith.constant 0 : i32
    return %c0_i32, %c0_i32_0 : i32, i32
  }
  func.func @transform_2(%arg0: i32) -> (i32, i32) {
    %c0_i32 = arith.constant 0 : i32
    %c0_i32_0 = arith.constant 0 : i32
    return %arg0, %c0_i32 : i32, i32
  }
}

</mosaic_0001>

<bundles_post_ra>
// kernel: tpu_custom_call.1
= control target key start
LH: loop header
LB: loop body
LE: loop exit
PB: predicated region body
PF: predicated region fallthrough
CT: control target
= control target key end

     0   :  { %7 = vsyncpa [#allocation3], 0  ;;  %s202_s0 = inlined_call_operand.hbm [shape: f32[16,32], index: 0, kind: input, shape index: {}]   ;;  %s203_s1 = inlined_call_operand.vmem [shape: f32[1,32], index: 1, kind: input, shape index: {}]   ;;  %s204_s2 = inlined_call_operand.hbm [shape: f32[16,32], index: 2, kind: output, shape index: {}]  }
   0x1   :  { %8 = vsyncpa [#allocation4], 0  ;;  %s144_s9 = smov [#allocation2]   ;;  %s96_s13 = scalar_lea.hbm %s202_s0, 256 }
   0x2   :  { %s14_s10 = sshll.u32 %s144_s9, 4  ;;  %p97_p0 = scmp.ne.s32.totalorder %s202_s0, %s96_s13  ;;  %s15_s10 = int_to_ptr.vmem [resolvable:$true] %s14_s10 }
   0x3   :  { %p100_p1 = scmp.lt.u32.totalorder %s96_s13, %s202_s0 }
   0x5   :  { %p102_p2 = pnand %p100_p1, %p97_p0 }
   0x7   :  { %105 = shalt.err (!%p102_p2)
}
   0x8   :  { %s106_s18 = scalar_lea.vmem %s15_s10, 256  ;;  %p111_p4 = scmp.lt.s32.totalorder %s15_s10, %s15_s10 }
   0x9   :  { %p107_p3 = scmp.ne.s32.totalorder %s15_s10, %s106_s18  ;;  %p112_p5 = scmp.lt.s32.totalorder %s106_s18, %s106_s18 }
   0xb   :  { %p113_p6 = por %p112_p5, %p111_p4 }
   0xd   :  { %p114_p7 = pnand %p113_p6, %p107_p3 }
   0xf   :  { %117 = shalt.err (!%p114_p7)
}
  0x10   :  { %s145_s19 = smov 128   ;;  %s146_s20 = smov 8  }
  0x11   :  { %20 = dma.hbm_to_vmem [thread:$0]  %s202_s0, 256, %s15_s10, [#allocation3], %s145_s19, %s145_s19, %s146_s20  }
  0x12   :  { %140 = dma.done.wait [#allocation3], 256  }
  0x13   :  { %141 = vsyncadd [#allocation3], 4294967040  ;;  %vm28_vm0 = vcmask 261120   ;;  %v26_v0 = vld [vmem:[#allocation2] sm:$0xff]  ;;  %v27_v1 = vld [vmem:[#allocation2 + $0x8] sm:$0xff]  ;;  %s147_s24 = smov [#allocation5]  }
  0x14   :  { %v29_v2 = vsel %vm28_vm0, %v26_v0, 0.0  ;;  %v37_v3 = vmul.f32 %v26_v0, %v26_v0  ;;  %v38_v4 = vmul.f32 %v27_v1, %v27_v1  ;;  %v32_v6 = vsel %vm28_vm0, %v27_v1, 0.0  ;;  %v87_v25 = vld [vmem:[%s203_s1] ss:$0 sm:$0xff]  ;;  %s75_s25 = sshll.u32 %s147_s24, 4  ;;  %s76_s25 = int_to_ptr.vmem [resolvable:$true] %s75_s25 }
  0x15   :  { %30 = vadd.xlane.f32.xlu0 %v29_v2  ;;  %s118_s26 = scalar_lea.vmem %s76_s25, 256  ;;  %p123_p9 = scmp.lt.s32.totalorder %s76_s25, %s76_s25 }
  0x16   :  { %v39_v5 = vsel %vm28_vm0, %v37_v3, 0.0  ;;  %v42_v7 = vsel %vm28_vm0, %v38_v4, 0.0  ;;  %p119_p8 = scmp.ne.s32.totalorder %s76_s25, %s118_s26  ;;  %p124_p10 = scmp.lt.s32.totalorder %s118_s26, %s118_s26 }
  0x17   :  { %40 = vadd.xlane.f32.xlu1 %v39_v5 }
  0x18   :  { %p125_p11 = por %p124_p10, %p123_p9 }
  0x19   :  { %33 = vadd.xlane.f32.xlu0 %v32_v6 }
  0x1a   :  { %p126_p12 = pnand %p125_p11, %p119_p8 }
  0x1b   :  { %43 = vadd.xlane.f32.xlu1 %v42_v7 }
  0xa2   :  { %v31_v8 = vpop.xlane.xlu0 %30 }
  0xa3   :  { %v35_v9 = vmul.f32 0.03125, %v31_v8 }
  0xa4   :  { %v41_v10 = vpop.xlane.xlu1 %40 }
  0xa5   :  { %v47_v11 = vmul.f32 %v35_v9, %v35_v9  ;;  %v45_v12 = vmul.f32 0.03125, %v41_v10 }
  0xa6   :  { %v34_v13 = vpop.xlane.xlu0 %33 }
  0xa7   :  { %v49_v14 = vsub.f32 %v45_v12, %v47_v11  ;;  %v36_v15 = vmul.f32 0.03125, %v34_v13 }
  0xa8   :  { %v44_v16 = vpop.xlane.xlu1 %43 }
  0xa9   :  { %v51_v17 = vmax.f32 %v49_v14, 0.0  ;;  %v48_v18 = vmul.f32 %v36_v15, %v36_v15  ;;  %v46_v19 = vmul.f32 0.03125, %v44_v16 }
  0xab   :  { %v53_v20 = vadd.f32 1e-05, %v51_v17  ;;  %v50_v21 = vsub.f32 %v46_v19, %v48_v18 }
  0xad   :  { %92 = vrsqrt.f32 %v53_v20  ;;  %v52_v22 = vmax.f32 %v50_v21, 0.0 }
  0xaf   :  { %v54_v23 = vadd.f32 1e-05, %v52_v22 }
  0xb1   :  { %94 = vrsqrt.f32 %v54_v23 }
  0xb7   :  { %v93_v24 = vpop.eup %92 }
  0xb8   :  { %v57_v26 = vmul.f32 %v93_v24, %v26_v0 }
  0xba   :  { %v66_v27 = vmul.f32 %v87_v25, %v57_v26 }
  0xbb   :  { %v95_v28 = vpop.eup %94 }
  0xbc   :  { %v58_v29 = vmul.f32 %v95_v28, %v27_v1  ;;  %68 = vst.msk [vmem:[#allocation5] sm:$0xff] %vm28_vm0, %v66_v27 }
  0xbe   :  { %v67_v30 = vmul.f32 %v87_v25, %v58_v29 }
  0xc0   :  { %69 = vst.msk [vmem:[#allocation5 + $0x8] sm:$0xff] %vm28_vm0, %v67_v30 }
  0xc1   :  { %129 = shalt.err (!%p126_p12)
}
  0xc2   :  { %s130_s28 = scalar_lea.hbm %s204_s2, 256 }
  0xc3   :  { %p131_p13 = scmp.ne.s32.totalorder %s204_s2, %s130_s28  ;;  %p134_p0 = scmp.lt.u32.totalorder %s130_s28, %s204_s2 }
  0xc5   :  { %p136_p1 = pnand %p134_p0, %p131_p13 }
  0xc7   :  { %139 = shalt.err (!%p136_p1)
}
  0xc8   :  { %81 = dma.vmem_to_hbm [thread:$0]  %s76_s25, 256, %s204_s2, [#allocation4], %s145_s19, %s145_s19, %s146_s20  }
  0xc9   :  { %142 = dma.done.wait [#allocation4], 256  }
  0xca   :  { %143 = vsyncadd [#allocation4], 4294967040 }
  0xcb   :  { %85 = vsyncpa [#allocation3], 1 }
  0xcc   :  { %86 = vsyncpa [#allocation4], 1 }

</bundles_post_ra>
